<compile_context>
chip_gen: v5e
topology: v5e:2x2
jax: 0.10.0
libtpu: 0.0.40
codegen_flags: <defaults>
</compile_context>

<pallas_src>
import functools

import numpy as np
import jax
import jax.numpy as jnp
from jax.experimental import pallas as pl
from jax.experimental.pallas import tpu as pltpu


def _build_pe_table(seq_len: int, d_model: int, dtype) -> jnp.ndarray:
    """Sinusoidal PE for positions [0, seq_len), shape (seq_len, 1, d_model).

    Matches the PyTorch buffer pe[:seq_len] exactly (same formula, f32 math).
    """
    position = jnp.arange(seq_len, dtype=jnp.float32)[:, None]              # (S, 1)
    div_term = jnp.exp(
        jnp.arange(0, d_model, 2, dtype=jnp.float32) * (-np.log(10000.0) / d_model)
    )                                                                        # (D//2,)
    angles = position * div_term                                             # (S, D//2)
    pe = jnp.zeros((seq_len, d_model), dtype=jnp.float32)
    pe = pe.at[:, 0::2].set(jnp.sin(angles))
    pe = pe.at[:, 1::2].set(jnp.cos(angles))
    return pe[:, None, :].astype(dtype)                                      # (S, 1, D)


def _pe_add_kernel(x_ref, pe_ref, o_ref):
    # x_ref: (ts, B, D)   activation tile
    # pe_ref: (ts, 1, D)  positional encoding tile (broadcast over batch)
    # o_ref: (ts, B, D)
    o_ref[...] = x_ref[...] + pe_ref[...]


def _choose_tile_seq(seq_len: int, bytes_per_pos: int,
                     target_block_bytes: int = 8 << 20) -> int:
    """Sequence positions per block: ~8 MiB x/out blocks, >=4 grid steps if possible."""
    ts = max(1, target_block_bytes // max(1, bytes_per_pos))
    if seq_len >= 4:
        # Keep >= 4 grid steps so both v7x TensorCores get >= 2 steps each
        # (pipelined; first DMA-in / last writeback not fully exposed).
        ts = min(ts, pl.cdiv(seq_len, 4))
    return int(min(ts, seq_len))


@functools.partial(jax.jit, static_argnames=("max_len", "donate_x"))
def positional_encoding_forward(x: jnp.ndarray, *, max_len: int = 5000,
                                donate_x: bool = False) -> jnp.ndarray:
    """x: (S, B, D). Returns x + pe[:S] with pe the sinusoidal encoding."""
    S, B, D = x.shape
    if S > max_len:
        raise ValueError(f"seq_len {S} exceeds max_len {max_len}")

    # Small (S, 1, D) pe table built by XLA once; streamed alongside x.
    pe = _build_pe_table(S, D, x.dtype)

    itemsize = x.dtype.itemsize
    ts = _choose_tile_seq(S, B * D * itemsize)
    grid = (pl.cdiv(S, ts),)

    cost = pl.CostEstimate(
        flops=S * B * D,
        transcendentals=0,
        bytes_accessed=(2 * S * B * D + S * D) * itemsize,
    )

    out = pl.pallas_call(
        _pe_add_kernel,
        out_shape=jax.ShapeDtypeStruct((S, B, D), x.dtype),
        grid_spec=pltpu.PrefetchScalarGridSpec(
            num_scalar_prefetch=0,
            grid=grid,
            in_specs=[
                pl.BlockSpec((ts, B, D), lambda i: (i, 0, 0)),   # x tile
                pl.BlockSpec((ts, 1, D), lambda i: (i, 0, 0)),   # pe tile (1/B the traffic)
            ],
            out_specs=pl.BlockSpec((ts, B, D), lambda i: (i, 0, 0)),
        ),
        compiler_params=pltpu.CompilerParams(
            dimension_semantics=("parallel",),
            vmem_limit_bytes=48 * 1024 * 1024,
        ),
        cost_estimate=cost,
        input_output_aliases=({0: 0} if donate_x else {}),
    )(x, pe)

    return out


if __name__ == "__main__":
    # Small shapes consistent with the module: seq=8, batch=2, d_model=32.
    S, B, D = 8, 2, 32
    MAX_LEN = 64  # module default is 5000; keep the reference buffer tiny here

    key = jax.random.PRNGKey(0)
    x = jax.random.normal(key, (S, B, D), dtype=jnp.float32)

    out = positional_encoding_forward(x, max_len=MAX_LEN)
    out = jax.block_until_ready(out)

    # Reference check against the exact PyTorch-style pe buffer (full max_len,
    # sliced to S, just like the torch forward).
    pe_full = _build_pe_table(MAX_LEN, D, jnp.float32)   # (max_len, 1, D)
    ref = x + pe_full[:S]
    np.testing.assert_allclose(np.asarray(out), np.asarray(ref), rtol=1e-5, atol=1e-5)

    print("KERNEL_OK")
</pallas_src>

<mosaic_0001>
module attributes {stable_mosaic.version = 11 : i64} {
  func.func @_pe_add_kernel(%arg0: i32, %arg1: memref<2x2x32xf32, #tpu.memory_space<vmem>>, %arg2: memref<2x1x32xf32, #tpu.memory_space<vmem>>, %arg3: memref<2x2x32xf32, #tpu.memory_space<vmem>>) attributes {dimension_semantics = [#tpu.dimension_semantics<parallel>], iteration_bounds = array<i64: 4>, scalar_prefetch = 0 : i64, scratch_operands = 0 : i64, tpu.core_type = #tpu.core_type<tc>, window_params = [{transform_indices = @transform_0, window_bounds = array<i64: 2, 2, 32>}, {transform_indices = @transform_1, window_bounds = array<i64: 2, 1, 32>}, {transform_indices = @transform_2, window_bounds = array<i64: 2, 2, 32>}]} {
    %c0 = arith.constant 0 : index
    %c0_0 = arith.constant 0 : index
    %c0_1 = arith.constant 0 : index
    %0 = vector.load %arg1[%c0, %c0_0, %c0_1] : memref<2x2x32xf32, #tpu.memory_space<vmem>>, vector<2x2x32xf32>
    %c0_2 = arith.constant 0 : index
    %c0_3 = arith.constant 0 : index
    %c0_4 = arith.constant 0 : index
    %1 = vector.load %arg2[%c0_2, %c0_3, %c0_4] : memref<2x1x32xf32, #tpu.memory_space<vmem>>, vector<2x1x32xf32>
    %2 = vector.broadcast %1 : vector<2x1x32xf32> to vector<2x2x32xf32>
    %3 = arith.addf %0, %2 : vector<2x2x32xf32>
    %c0_5 = arith.constant 0 : index
    %c0_6 = arith.constant 0 : index
    %c0_7 = arith.constant 0 : index
    %4 = vector.load %arg3[%c0_5, %c0_6, %c0_7] : memref<2x2x32xf32, #tpu.memory_space<vmem>>, vector<2x2x32xf32>
    tpu.vector_store %arg3[%c0_5, %c0_6, %c0_7], %3 {strides = array<i32>} : memref<2x2x32xf32, #tpu.memory_space<vmem>>, vector<2x2x32xf32>,
    return
  }
  func.func @transform_0(%arg0: i32) -> (i32, i32, i32) {
    %c0_i32 = arith.constant 0 : i32
    %c0_i32_0 = arith.constant 0 : i32
    %c0_i32_1 = arith.constant 0 : i32
    return %arg0, %c0_i32, %c0_i32_0 : i32, i32, i32
  }
  func.func @transform_1(%arg0: i32) -> (i32, i32, i32) {
    %c0_i32 = arith.constant 0 : i32
    %c0_i32_0 = arith.constant 0 : i32
    %c0_i32_1 = arith.constant 0 : i32
    return %arg0, %c0_i32, %c0_i32_0 : i32, i32, i32
  }
  func.func @transform_2(%arg0: i32) -> (i32, i32, i32) {
    %c0_i32 = arith.constant 0 : i32
    %c0_i32_0 = arith.constant 0 : i32
    %c0_i32_1 = arith.constant 0 : i32
    return %arg0, %c0_i32, %c0_i32_0 : i32, i32, i32
  }
}

</mosaic_0001>

<bundles_post_ra>
// kernel: positional_encoding_forward.1
= control target key start
LH: loop header
LB: loop body
LE: loop exit
PB: predicated region body
PF: predicated region fallthrough
CT: control target
= control target key end

     0   :  { %7 = vsyncpa [#allocation3], 0  ;;  %s494_s0 = inlined_call_operand.vmem [shape: f32[8,2,32], index: 0, kind: input, shape index: {}]   ;;  %s495_s1 = inlined_call_operand.vmem [shape: f32[8,1,32], index: 1, kind: input, shape index: {}]   ;;  %s496_s2 = inlined_call_operand.hbm [shape: f32[8,2,32], index: 2, kind: output, shape index: {}]  }
   0x1   :  { %9 = vsyncpa [#allocation3 + $0x1], 0  ;;  %s404_s9 = smov 0   ;;  %s406_s10 = smov 0  }
   0x2   :  { %s408_s11 = smov 0   ;;  %s410_s12 = smov 0  }
   0x3 LB: > { %s425_s13 = sadd.s32 4294967295, %s385_s12   ;;  %s266_s14 = sadd.s32 4294967294, %s385_s12   ;;  %s385_s12 = sphi %s410_s12, %s502_s12   ;;  %s381_s11 = sphi %s408_s11, %s501_s11   ;;  %s377_s10 = sphi %s406_s10, %s500_s10   ;;  %s373_s9 = sphi %s404_s9, %s499_s9  }
   0x4   : > { %s429_s15 = sadd.s32 1, %s385_s12   ;;  %s74_s16 = sadd.s32 1, %s381_s11 }
   0x5   : > { %s71_s17 = ssub.s32 %s385_s12, %s429_s15  ;;  %p84_p0 = scmp.ne.s32.totalorder %s381_s11, %s377_s10 }
   0x6   : > { %p72_p1 = scmp.eq.s32.totalorder %s71_s17, 0  ;;  %p85_p2 = scmp.eq.s32.totalorder %s425_s13, 3 }
   0x7   : > { %p90_p3 = scmp.ne.s32.totalorder %s377_s10, %s373_s9  ;;  %p91_p4 = scmp.eq.s32.totalorder %s266_s14, 3 }
   0x8   : > { %s440_s18 = scalar_select %p72_p1, %s381_s11, %s74_s16  }
   0x9   : > { %p442_p5 = por %p85_p2, %p84_p0  ;;  %p446_p6 = por %p91_p4, %p90_p3 }
   0xa   : > { %p269_p7 = scmp.ge.s32.totalorder %s385_s12, 1  ;;  %p126_p8 = scmp.lt.s32.totalorder %s385_s12, 5 }
   0xc   : > { %p127_p9 = pnand %p269_p7, %p126_p8 }
   0xd   : > { %s149_s21 = sand.u32 (!%p127_p9), 1, %s377_s10   ;;  %s271_s22 = sshll.u32 (!%p127_p9), %s425_s13, 1 }
   0xe   : > { %130 = sbr.rel (%p127_p9) target bundleno = 33 (0x21), region = 28  ;;  %s270_s23 = sshll.u32 (!%p127_p9), %s149_s21, 2 }
   0xf   : > { %p153_p10 = scmp.lt.s32.totalorder (!%p127_p9), %s271_s22, 7  ;;  %s151_s24 = scalar_lea.vmem (!%p127_p9), [#allocation2], %s270_s23 }
  0x10   : > { %s192_s25 = sshll.u32 (!%p127_p9), %s151_s24, 4  ;;  %s279_s26 = sshll.u32 (!%p127_p9), %s425_s13, 2  ;;  %s461_s25 = int_to_ptr.vmem [resolvable:$true] %s192_s25 }
  0x11   : > { %s191_s8 = scalar_lea.hbm (!%p127_p9), %s496_s2, %s279_s26  ;;  %s180_s14 = scalar_lea.sflag (!%p127_p9), [#allocation3], %s149_s21 }
  0x12   : > { %s194_s13 = sshll.u32 (!%p127_p9), %s191_s8, 4  ;;  %s195_s13 = int_to_ptr.hbm [resolvable:$true] %s194_s13 }
  0x13   : > { %s504_s22 = smov (!%p153_p10, %s271_s22), 7  ;;  %vm176_vm0 = vcmask 254976   ;;  %s337_s16 = sshra.s32 %s195_s13, 4  ;;  %s338_s16 = int_to_ptr.hbm [resolvable:$true] %s337_s16 }
  0x14   : > { %s272_s27 = sshll.u32 %s504_s22, 1  ;;  %s161_s30 = scalar_lea.vmem %s495_s1, %s504_s22 }
  0x15   : > { %s156_s5 = scalar_lea.vmem %s494_s0, %s272_s27  ;;  %v321_v0 = vld [vmem:[%s161_s30] ss:$0 sm:$0xff]  ;;  %v322_v3 = vld [vmem:[%s161_s30 + $0x1] ss:$0 sm:$0xff]  ;;  %s339_s17 = scalar_lea.hbm %s338_s16, 4 }
  0x16   : > { %v164_v1 = vld [vmem:[%s156_s5] sm:$0x3]  ;;  %v165_v2 = vld [vmem:[%s156_s5 + $0x2] sm:$0x3]  ;;  %p340_p11 = scmp.ne.s32.totalorder %s338_s16, %s339_s17  ;;  %s343_s27 = scalar_lea.hbm %s496_s2, 16 }
  0x17   : > { %v174_v4 = vadd.f32 %v321_v0, %v164_v1  ;;  %v175_v5 = vadd.f32 %v322_v3, %v165_v2  ;;  %p344_p0 = scmp.lt.s32.totalorder %s338_s16, %s496_s2  ;;  %p345_p1 = scmp.lt.s32.totalorder %s343_s27, %s339_s17 }
  0x18   : > { %p341_p12 = pnand %p340_p11, %p442_p5 }
  0x19   : > { %177 = vst.msk [vmem:[%s151_s24] sm:$0x3] %vm176_vm0, %v174_v4  ;;  %p346_p2 = por %p345_p1, %p344_p0 }
  0x1a   : > { %178 = vst.msk [vmem:[%s151_s24 + $0x2] sm:$0x3] %vm176_vm0, %v175_v5  ;;  %p342_p13 = pneg %p341_p12 }
  0x1c   : > { %p347_p3 = pnand %p346_p2, %p342_p13 }
  0x1e   : > { %350 = shalt.err (!%p347_p3)
}
  0x1f   : > { %s387_s21 = smov 32   ;;  %s388_s24 = smov 2  }
  0x20   : > { %280 = dma.vmem_to_hbm [thread:$0]  (%p442_p5), %s461_s25, 64, %s195_s13, %s180_s14, %s387_s21, %s387_s21, %s388_s24  }
  0x21 PF: > { %p286_p4 = scmp.ge.s32.totalorder %s385_s12, 2  ;;  %s209_s29 = sand.u32 1, %s373_s9  }
  0x22   : > { %s210_s30 = scalar_lea.sflag [#allocation3], %s209_s29 }
  0x23   : > { %p283_p7 = pnand %p286_p4, %p446_p6 }
  0x25   : > { %p284_p8 = pneg %p283_p7 }
  0x27   : > { %368 = dma.done.wait (%p284_p8), %s210_s30, 64  }
  0x28   : > { %370 = vsyncadd (%p284_p8), %s210_s30, 4294967232  ;;  %p12_p9 = scmp.ge.s32.totalorder %s429_s15, 6   ;;  %s499_s9 = smov %s377_s10 }
  0x29   : > { %s500_s10 = smov %s381_s11  ;;  %s501_s11 = smov %s440_s18 }
  0x2a   : > { %s502_s12 = smov %s429_s15  ;;  %14 = sbr.rel (!%p12_p9) target bundleno = 3 (0x3), region = 66 }
  0x2f   :  { %216 = vsyncpa [#allocation3], 1 }
  0x30   :  { %218 = vsyncpa [#allocation3 + $0x1], 1 }

</bundles_post_ra>
